<compile_context>
chip_gen: v6e
topology: v6e:2x2x1
jax: 0.10.0
libtpu: 0.0.40
codegen_flags: <defaults>
</compile_context>

<pallas_src>
import functools

import jax
import jax.numpy as jnp
from jax.experimental import pallas as pl
from jax.experimental.pallas import tpu as pltpu


_VMEM_BUDGET_BYTES = 48 * 1024 * 1024          # conservative for v7x's 64 MiB/TC
_VMEM_SLACK_BYTES = 2 * 1024 * 1024
_MAX_RESIDENT_WEIGHT_BYTES = 20 * 1024 * 1024  # above this, stream weight in N tiles
_WEIGHT_STREAM_BUDGET_BYTES = 16 * 1024 * 1024  # double-buffered weight block budget
_X_BLOCK_TARGET_BYTES = 2 * 1024 * 1024         # amortizes ~0.35us per grid step


def _round_up(x: int, mult: int) -> int:
    return ((x + mult - 1) // mult) * mult


def _seq_linear_kernel(x_ref, w_ref, b_ref, o_ref, *, pre_activation, compute_dtype):
    x = x_ref[...]                                # (TM, K)
    if pre_activation:
        x = jnp.maximum(x, 0.0)                   # ReLU (f32-safe on v5e)
    if compute_dtype is not None:
        x = x.astype(compute_dtype)               # bf16 operands, f32 accumulate
    # Weight is already (K, N_block): contraction feeds the MXU directly.
    y = jnp.dot(x, w_ref[...], preferred_element_type=jnp.float32)
    o_ref[...] = (y + b_ref[...]).astype(o_ref.dtype)   # (1, N) bias broadcasts


def prepare_params(weight, bias, *, use_bf16_matmul: bool = False):
    """One-time layout prep (hoist out of the per-forward path).

    weight: (num_outputs, num_inputs) PyTorch nn.Linear layout
    bias:   (num_outputs,)
    Returns (w_t, b2d, num_outputs) with w_t laid out as (num_inputs, n_block).
    Small N (<128) is left unpadded (masked stores beat 8x write amplification);
    N >= 128 is padded to a multiple of 128 for lane-dense stores.
    """
    num_outputs, num_inputs = weight.shape
    n_block = _round_up(num_outputs, 128) if num_outputs >= 128 else num_outputs
    w_t = weight.T                                 # (K, N) one-time transpose
    b = bias
    if n_block != num_outputs:
        w_t = jnp.pad(w_t, ((0, 0), (0, n_block - num_outputs)))
        b = jnp.pad(bias, (0, n_block - num_outputs))
    if use_bf16_matmul:
        w_t = w_t.astype(jnp.bfloat16)             # halves weight HBM/DMA bytes
    b2d = b.reshape(1, n_block).astype(jnp.float32)
    return w_t, b2d, num_outputs


def sequential_linear(sequences, sequence_lengths, weight=None, bias=None, *,
                      pre_activation: bool = True,
                      use_bf16_matmul: bool = False,
                      prepared_params=None,
                      tile_m: int | None = None,
                      tile_n: int | None = None,
                      max_resident_weight_bytes: int = _MAX_RESIDENT_WEIGHT_BYTES):
    """Pallas implementation of SequentialLinear.forward.

    sequences:        (..., num_inputs)  (f32; bf16 activations also accepted)
    sequence_lengths: any array, passed through unchanged
    weight/bias:      raw nn.Linear params, OR pass prepared_params from
                      prepare_params() to hoist the weight transform out of the
                      per-call path.
    """
    if prepared_params is None:
        prepared_params = prepare_params(weight, bias, use_bf16_matmul=use_bf16_matmul)
    w_t, b2d, num_outputs = prepared_params

    *lead, num_inputs = sequences.shape
    if w_t.shape[0] != num_inputs:
        raise ValueError("weight / input feature-size mismatch")
    n_block = w_t.shape[1]

    m = 1
    for d in lead:
        m *= d
    x2d = sequences.reshape(m, num_inputs)         # contiguous reshape, no extra HBM pass

    x_item = x2d.dtype.itemsize
    w_item = w_t.dtype.itemsize
    out_item = x2d.dtype.itemsize
    compute_dtype = jnp.bfloat16 if w_t.dtype == jnp.bfloat16 else None

    # ---------------- tiling decisions ----------------
    w_bytes = num_inputs * n_block * w_item
    resident_weight = (tile_n is None) and (w_bytes <= max_resident_weight_bytes)

    if resident_weight:
        tn = n_block
    elif tile_n is not None:
        tn = int(tile_n)
    elif n_block < 128:
        tn = n_block
    else:
        tn = (_WEIGHT_STREAM_BUDGET_BYTES // (2 * num_inputs * w_item)) // 128 * 128
        tn = int(max(128, min(tn, n_block)))

    row_in_bytes = num_inputs * x_item
    if tile_m is not None:
        tm = _round_up(int(tile_m), 8)
    else:
        # ~2 MiB x block (>=512 rows) amortizes per-grid-step overhead.
        tm = _round_up(max(512, _X_BLOCK_TARGET_BYTES // max(row_in_bytes, 1)), 8)
        tm = min(tm, 8192)
        # v7x megacore: keep >= 4 M tiles when there is enough work to split.
        if m >= 4 * 512:
            tm = min(tm, _round_up(pl.cdiv(m, 4), 8))
    tm = min(tm, _round_up(m, 8))

    # VMEM budget (conservative across v5e/v6e/v7x): shrink tm if needed.
    if resident_weight:
        resident_bytes = w_bytes + 8 * n_block * 4               # Buffered(1) weight + bias
    else:
        resident_bytes = 2 * num_inputs * tn * w_item + 2 * 8 * tn * 4
    per_row_bytes = 2 * (row_in_bytes + tn * out_item)           # double-buffered x + out
    avail = _VMEM_BUDGET_BYTES - _VMEM_SLACK_BYTES - resident_bytes
    tm_cap = max(8, (avail // per_row_bytes) // 8 * 8) if avail > 0 else 8
    tm = int(max(8, min(tm, tm_cap)))
    # TODO(synk): for extreme K (weight column > budget even at tn=128), add a
    # K-reduction grid axis with a VMEM accumulator; not needed for this module.

    vmem_need = resident_bytes + tm * per_row_bytes + _VMEM_SLACK_BYTES
    vmem_limit = int(min(56 * 1024 * 1024, max(16 * 1024 * 1024, vmem_need)))

    kernel = functools.partial(_seq_linear_kernel,
                               pre_activation=pre_activation,
                               compute_dtype=compute_dtype)

    cost = pl.CostEstimate(
        flops=2 * m * num_inputs * num_outputs,
        transcendentals=0,
        bytes_accessed=int(m * num_inputs * x_item + w_bytes + n_block * 4
                           + m * n_block * out_item))

    out_shape = jax.ShapeDtypeStruct((m, n_block), x2d.dtype)

    def _run(single_buffer_params: bool):
        if resident_weight:
            if single_buffer_params:
                w_spec = pl.BlockSpec((num_inputs, n_block), lambda i: (0, 0),
                                      pipeline_mode=pl.Buffered(buffer_count=1))
                b_spec = pl.BlockSpec((1, n_block), lambda i: (0, 0),
                                      pipeline_mode=pl.Buffered(buffer_count=1))
            else:
                w_spec = pl.BlockSpec((num_inputs, n_block), lambda i: (0, 0))
                b_spec = pl.BlockSpec((1, n_block), lambda i: (0, 0))
            grid = (pl.cdiv(m, tm),)              # last block may be partial (masked)
            in_specs = [pl.BlockSpec((tm, num_inputs), lambda i: (i, 0)), w_spec, b_spec]
            out_specs = pl.BlockSpec((tm, n_block), lambda i: (i, 0))
            dims = ("parallel",)
        else:
            # Stream the weight in N tiles; M innermost so each weight tile is
            # DMA'd once per N tile.  No cross-step state -> partial blocks safe.
            grid = (pl.cdiv(n_block, tn), pl.cdiv(m, tm))
            in_specs = [pl.BlockSpec((tm, num_inputs), lambda j, i: (i, 0)),
                        pl.BlockSpec((num_inputs, tn), lambda j, i: (0, j)),
                        pl.BlockSpec((1, tn), lambda j, i: (0, j))]
            out_specs = pl.BlockSpec((tm, tn), lambda j, i: (i, j))
            dims = ("parallel", "parallel")
        return pl.pallas_call(
            kernel,
            out_shape=out_shape,
            grid_spec=pltpu.PrefetchScalarGridSpec(
                num_scalar_prefetch=0, grid=grid,
                in_specs=in_specs, out_specs=out_specs),
            compiler_params=pltpu.CompilerParams(
                dimension_semantics=dims, vmem_limit_bytes=vmem_limit),
            cost_estimate=cost,
        )(x2d, w_t, b2d)

    if resident_weight:
        try:
            out2d = _run(True)
        except Exception:
            # pl.Buffered(1) not supported by this jax build -> default double buffering.
            out2d = _run(False)
    else:
        out2d = _run(False)

    if n_block != num_outputs:                    # only when N was lane-padded (N >= 128)
        out2d = out2d[:, :num_outputs]
    out = out2d.reshape(*lead, num_outputs)
    return out, sequence_lengths


if __name__ == "__main__":
    # Small shapes consistent with the module: (batch, seq, num_inputs)
    batch, seq, num_inputs, num_outputs = 2, 8, 32, 16

    key = jax.random.PRNGKey(0)
    kx, kw, kb, kl = jax.random.split(key, 4)

    sequences = jax.random.normal(kx, (batch, seq, num_inputs), dtype=jnp.float32)
    sequence_lengths = jax.random.randint(kl, (batch,), 1, seq + 1, dtype=jnp.int32)

    # nn.Linear-style uniform(-1/sqrt(K), 1/sqrt(K)) init.
    bound = 1.0 / (num_inputs ** 0.5)
    weight = jax.random.uniform(kw, (num_outputs, num_inputs),
                                minval=-bound, maxval=bound, dtype=jnp.float32)
    bias = jax.random.uniform(kb, (num_outputs,),
                              minval=-bound, maxval=bound, dtype=jnp.float32)

    ref = jnp.maximum(sequences, 0.0) @ weight.T + bias

    # f32 path, prepared (hoisted) params reused across calls: tight check.
    params = prepare_params(weight, bias)
    out, lens = sequential_linear(sequences, sequence_lengths, prepared_params=params,
                                  pre_activation=True)
    out = jax.block_until_ready(out)
    lens = jax.block_until_ready(lens)
    assert out.shape == (batch, seq, num_outputs)
    assert jnp.allclose(out, ref, atol=1e-5, rtol=1e-5)
    assert jnp.array_equal(lens, sequence_lengths)

    # pre_activation=False path (plain Linear).
    ref_noact = sequences @ weight.T + bias
    out_na, _ = sequential_linear(sequences, sequence_lengths, weight, bias,
                                  pre_activation=False)
    assert jnp.allclose(jax.block_until_ready(out_na), ref_noact, atol=1e-5, rtol=1e-5)

    # bf16 operand / f32 accumulate path (MXU-native on v5e/v6e/v7x): loose check.
    params_bf16 = prepare_params(weight, bias, use_bf16_matmul=True)
    out_bf16, _ = sequential_linear(sequences, sequence_lengths,
                                    prepared_params=params_bf16, pre_activation=True)
    assert jnp.allclose(jax.block_until_ready(out_bf16), ref, atol=5e-2, rtol=5e-2)

    # Exercise the N-tiled (non-resident weight) path, lane-padded N, and a
    # partial last M block (m=128 with tm=40).
    n2, k2, b2sz, s2sz = 200, 64, 2, 64
    kx2, kw2, kb2 = jax.random.split(jax.random.PRNGKey(1), 3)
    seq2 = jax.random.normal(kx2, (b2sz, s2sz, k2), dtype=jnp.float32)
    w2 = jax.random.uniform(kw2, (n2, k2), minval=-0.1, maxval=0.1, dtype=jnp.float32)
    b2 = jax.random.uniform(kb2, (n2,), minval=-0.1, maxval=0.1, dtype=jnp.float32)
    ref2 = jnp.maximum(seq2, 0.0) @ w2.T + b2
    out2, _ = sequential_linear(seq2, sequence_lengths, w2, b2, pre_activation=True,
                                max_resident_weight_bytes=1, tile_n=128, tile_m=40)
    out2 = jax.block_until_ready(out2)
    assert out2.shape == (b2sz, s2sz, n2)
    assert jnp.allclose(out2, ref2, atol=1e-4, rtol=1e-4)

    print("KERNEL_OK")
</pallas_src>

<mosaic_0001>
module attributes {stable_mosaic.version = 11 : i64} {
  func.func @_seq_linear_kernel(%arg0: i32, %arg1: memref<16x32xf32, #tpu.memory_space<vmem>>, %arg2: memref<32x16xf32, #tpu.memory_space<vmem>>, %arg3: memref<1x16xf32, #tpu.memory_space<vmem>>, %arg4: memref<16x16xf32, #tpu.memory_space<vmem>>) attributes {dimension_semantics = [#tpu.dimension_semantics<parallel>], iteration_bounds = array<i64: 1>, scalar_prefetch = 0 : i64, scratch_operands = 0 : i64, tpu.core_type = #tpu.core_type<tc>, window_params = [{transform_indices = @transform_0, window_bounds = array<i64: 16, 32>}, {pipeline_mode = #tpu.pipeline_mode<synchronous>, transform_indices = @transform_1, window_bounds = array<i64: 32, 16>}, {pipeline_mode = #tpu.pipeline_mode<synchronous>, transform_indices = @transform_2, window_bounds = array<i64: 1, 16>}, {transform_indices = @transform_3, window_bounds = array<i64: 16, 16>}]} {
    %c0 = arith.constant 0 : index
    %c0_0 = arith.constant 0 : index
    %0 = vector.load %arg1[%c0, %c0_0] : memref<16x32xf32, #tpu.memory_space<vmem>>, vector<16x32xf32>
    %cst = arith.constant 0.000000e+00 : f32
    %1 = vector.broadcast %cst : f32 to vector<16x32xf32>
    %2 = arith.maximumf %0, %1 : vector<16x32xf32>
    %c0_1 = arith.constant 0 : index
    %c0_2 = arith.constant 0 : index
    %3 = vector.load %arg2[%c0_1, %c0_2] : memref<32x16xf32, #tpu.memory_space<vmem>>, vector<32x16xf32>
    %cst_3 = arith.constant dense<0.000000e+00> : vector<16x16xf32>
    %4 = tpu.matmul %2, %3, %cst_3 {dimension_numbers = #tpu.dot_dimension_numbers<[1], [0], [0], [1], [0, 0, 1, 1], [], []>} : vector<16x32xf32>, vector<32x16xf32>, vector<16x16xf32> -> vector<16x16xf32>
    %c0_4 = arith.constant 0 : index
    %c0_5 = arith.constant 0 : index
    %5 = vector.load %arg3[%c0_4, %c0_5] : memref<1x16xf32, #tpu.memory_space<vmem>>, vector<1x16xf32>
    %6 = vector.broadcast %5 : vector<1x16xf32> to vector<16x16xf32>
    %7 = arith.addf %4, %6 : vector<16x16xf32>
    %c0_6 = arith.constant 0 : index
    %c0_7 = arith.constant 0 : index
    %8 = vector.load %arg4[%c0_6, %c0_7] : memref<16x16xf32, #tpu.memory_space<vmem>>, vector<16x16xf32>
    tpu.vector_store %arg4[%c0_6, %c0_7], %7 {strides = array<i32>} : memref<16x16xf32, #tpu.memory_space<vmem>>, vector<16x16xf32>,
    return
  }
  func.func @transform_0(%arg0: i32) -> (i32, i32) {
    %c0_i32 = arith.constant 0 : i32
    %c0_i32_0 = arith.constant 0 : i32
    return %arg0, %c0_i32 : i32, i32
  }
  func.func @transform_1(%arg0: i32) -> (i32, i32) {
    %c0_i32 = arith.constant 0 : i32
    %c0_i32_0 = arith.constant 0 : i32
    %c0_i32_1 = arith.constant 0 : i32
    return %c0_i32, %c0_i32_0 : i32, i32
  }
  func.func @transform_2(%arg0: i32) -> (i32, i32) {
    %c0_i32 = arith.constant 0 : i32
    %c0_i32_0 = arith.constant 0 : i32
    %c0_i32_1 = arith.constant 0 : i32
    return %c0_i32, %c0_i32_0 : i32, i32
  }
  func.func @transform_3(%arg0: i32) -> (i32, i32) {
    %c0_i32 = arith.constant 0 : i32
    %c0_i32_0 = arith.constant 0 : i32
    return %arg0, %c0_i32 : i32, i32
  }
}

module attributes {stable_mosaic.version = 11 : i64} {
  func.func @_seq_linear_kernel(%arg0: i32, %arg1: memref<16x32xf32, #tpu.memory_space<vmem>>, %arg2: memref<32x16xf32, #tpu.memory_space<vmem>>, %arg3: memref<1x16xf32, #tpu.memory_space<vmem>>, %arg4: memref<16x16xf32, #tpu.memory_space<vmem>>) attributes {dimension_semantics = [#tpu.dimension_semantics<parallel>], iteration_bounds = array<i64: 1>, scalar_prefetch = 0 : i64, scratch_operands = 0 : i64, tpu.core_type = #tpu.core_type<tc>, window_params = [{transform_indices = @transform_0, window_bounds = array<i64: 16, 32>}, {pipeline_mode = #tpu.pipeline_mode<synchronous>, transform_indices = @transform_1, window_bounds = array<i64: 32, 16>}, {pipeline_mode = #tpu.pipeline_mode<synchronous>, transform_indices = @transform_2, window_bounds = array<i64: 1, 16>}, {transform_indices = @transform_3, window_bounds = array<i64: 16, 16>}]} {
    %c0 = arith.constant 0 : index
    %c0_0 = arith.constant 0 : index
    %0 = vector.load %arg1[%c0, %c0_0] : memref<16x32xf32, #tpu.memory_space<vmem>>, vector<16x32xf32>
    %cst = arith.constant 0.000000e+00 : f32
    %1 = vector.broadcast %cst : f32 to vector<16x32xf32>
    %2 = arith.maximumf %0, %1 : vector<16x32xf32>
    %c0_1 = arith.constant 0 : index
    %c0_2 = arith.constant 0 : index
    %3 = vector.load %arg2[%c0_1, %c0_2] : memref<32x16xf32, #tpu.memory_space<vmem>>, vector<32x16xf32>
    %cst_3 = arith.constant dense<0.000000e+00> : vector<16x16xf32>
    %4 = tpu.matmul %2, %3, %cst_3 {dimension_numbers = #tpu.dot_dimension_numbers<[1], [0], [0], [1], [0, 0, 1, 1], [], []>} : vector<16x32xf32>, vector<32x16xf32>, vector<16x16xf32> -> vector<16x16xf32>
    %c0_4 = arith.constant 0 : index
    %c0_5 = arith.constant 0 : index
    %5 = vector.load %arg3[%c0_4, %c0_5] : memref<1x16xf32, #tpu.memory_space<vmem>>, vector<1x16xf32>
    %6 = vector.broadcast %5 : vector<1x16xf32> to vector<16x16xf32>
    %7 = arith.addf %4, %6 : vector<16x16xf32>
    %c0_6 = arith.constant 0 : index
    %c0_7 = arith.constant 0 : index
    %8 = vector.load %arg4[%c0_6, %c0_7] : memref<16x16xf32, #tpu.memory_space<vmem>>, vector<16x16xf32>
    tpu.vector_store %arg4[%c0_6, %c0_7], %7 {strides = array<i32>} : memref<16x16xf32, #tpu.memory_space<vmem>>, vector<16x16xf32>,
    return
  }
  func.func @transform_0(%arg0: i32) -> (i32, i32) {
    %c0_i32 = arith.constant 0 : i32
    %c0_i32_0 = arith.constant 0 : i32
    return %arg0, %c0_i32 : i32, i32
  }
  func.func @transform_1(%arg0: i32) -> (i32, i32) {
    %c0_i32 = arith.constant 0 : i32
    %c0_i32_0 = arith.constant 0 : i32
    %c0_i32_1 = arith.constant 0 : i32
    return %c0_i32, %c0_i32_0 : i32, i32
  }
  func.func @transform_2(%arg0: i32) -> (i32, i32) {
    %c0_i32 = arith.constant 0 : i32
    %c0_i32_0 = arith.constant 0 : i32
    %c0_i32_1 = arith.constant 0 : i32
    return %c0_i32, %c0_i32_0 : i32, i32
  }
  func.func @transform_3(%arg0: i32) -> (i32, i32) {
    %c0_i32 = arith.constant 0 : i32
    %c0_i32_0 = arith.constant 0 : i32
    return %arg0, %c0_i32 : i32, i32
  }
}

</mosaic_0001>

<bundles_post_ra>
// kernel: tpu_custom_call.1
= control target key start
LH: loop header
LB: loop body
LE: loop exit
PB: predicated region body
PF: predicated region fallthrough
CT: control target
= control target key end

     0   :  { %vm30_vm0 = vcmask 261120   ;;  %s223_s0 = inlined_call_operand.vmem [shape: f32[16,32], index: 0, kind: input, shape index: {}]   ;;  %s224_s1 = inlined_call_operand.vmem [shape: f32[32,16], index: 1, kind: input, shape index: {}]   ;;  %s225_s2 = inlined_call_operand.vmem [shape: f32[1,16], index: 2, kind: input, shape index: {}]   ;;  %s226_s3 = inlined_call_operand.hbm [shape: f32[16,16], index: 3, kind: output, shape index: {}]  }
   0x1   :  { %v22_v0 = vld [vmem:[%s224_s1 + $0x18] sm:$0xff]  ;;  %v21_v1 = vld [vmem:[%s224_s1 + $0x10] sm:$0xff]  ;;  %v15_v2 = vld [vmem:[%s223_s0] sm:$0xff] }
   0x2   :  { %140 = vmatprep.subr.mxu0 %v22_v0  ;;  %v20_v3 = vld [vmem:[%s224_s1 + $0x8] sm:$0xff]  ;;  %v17_v4 = vmax.f32 %v15_v2, 0.0 }
   0x3   :  { %141 = vmatpush3.msra.mxu0 %v22_v0  ;;  %v16_v5 = vld [vmem:[%s223_s0 + $0x8] sm:$0xff] }
   0x4   :  { %8 = vsyncpa [#allocation3], 0  ;;  %142 = vmatprep.subr.mxu0 %v21_v1  ;;  %v19_v6 = vld [vmem:[%s224_s1] sm:$0xff]  ;;  %148 = vmatprep.mubr.msk.f32.mxu0 %vm30_vm0, %v17_v4  ;;  %v18_v7 = vmax.f32 %v16_v5, 0.0  ;;  %s176_s26 = smov [#allocation2]   ;;  %vm112_vm1 = vcmask 130048  }
   0x5   :  { %143 = vmatpush3.msra.mxu0 %v21_v1  ;;  %v131_v8 = vld [vmem:[%s225_s2] ss:$0 sm:$0xff]  ;;  %s120_s0 = sshll.u32 %s176_s26, 4  ;;  %s121_s0 = int_to_ptr.vmem [resolvable:$true] %s120_s0 }
   0x6   :  { %144 = vmatprep.subr.mxu0 %v20_v3  ;;  %s154_s1 = scalar_lea.vmem %s121_s0, 256  ;;  %p159_p1 = scmp.lt.s32.totalorder %s121_s0, %s121_s0 }
   0x7   :  { %145 = vmatpush3.msra.mxu0 %v20_v3  ;;  %p155_p0 = scmp.ne.s32.totalorder %s121_s0, %s154_s1  ;;  %p160_p2 = scmp.lt.s32.totalorder %s154_s1, %s154_s1 }
   0x8   :  { %146 = vmatprep.subr.mxu0 %v19_v6 }
   0x9   :  { %147 = vmatpush3.msra.mxu0 %v19_v6  ;;  %p161_p3 = por %p160_p2, %p159_p1 }
   0xa   :  { %149 = vmatmul.mubr.msk.f32.vlgmr.msra.gmra.mxu0 %vm30_vm0, %v18_v7 }
   0xb   :  { %p162_p4 = pnand %p161_p3, %p155_p0 }
  0xca   :  { %v150_v9 = vpop.f32.mrf.mxu0 }
  0xcb   :  { %v109_v10 = vadd.f32 %v150_v9, %v131_v8 }
  0xcc   :  { %v103_v11 = vpop.f32.mrf.mxu0 }
  0xcd   :  { %114 = vst.msk [vmem:[#allocation2 + $0x8] sm:$0xff] %vm112_vm1, %v109_v10  ;;  %v104_v12 = vadd.f32 %v131_v8, %v103_v11 }
  0xcf   :  { %113 = vst.msk [vmem:[#allocation2] sm:$0xff] %vm112_vm1, %v104_v12 }
  0xd0   :  { %165 = shalt.err (!%p162_p4)
}
  0xd1   :  { %s177_s27 = smov 128   ;;  %s178_s28 = smov 8  }
  0xd2   :  { %126 = dma.vmem_to_hbm [thread:$0]  %s121_s0, 256, %s226_s3, [#allocation3], %s177_s27, %s177_s27, %s178_s28  }
  0xd3   :  { %174 = dma.done.wait [#allocation3], 256  }
  0xd4   :  { %175 = vsyncadd [#allocation3], 4294967040 }
  0xd5   :  { %130 = vsyncpa [#allocation3], 1 }

// kernel: tpu_custom_call.1
= control target key start
LH: loop header
LB: loop body
LE: loop exit
PB: predicated region body
PF: predicated region fallthrough
CT: control target
= control target key end

     0   :  { %vm30_vm0 = vcmask 261120   ;;  %s223_s0 = inlined_call_operand.vmem [shape: f32[16,32], index: 0, kind: input, shape index: {}]   ;;  %s224_s1 = inlined_call_operand.vmem [shape: f32[32,16], index: 1, kind: input, shape index: {}]   ;;  %s225_s2 = inlined_call_operand.vmem [shape: f32[1,16], index: 2, kind: input, shape index: {}]   ;;  %s226_s3 = inlined_call_operand.hbm [shape: f32[16,16], index: 3, kind: output, shape index: {}]  }
   0x1   :  { %v22_v0 = vld [vmem:[%s224_s1 + $0x18] sm:$0xff]  ;;  %v21_v1 = vld [vmem:[%s224_s1 + $0x10] sm:$0xff]  ;;  %v15_v2 = vld [vmem:[%s223_s0] sm:$0xff] }
   0x2   :  { %140 = vmatprep.subr.mxu0 %v22_v0  ;;  %v20_v3 = vld [vmem:[%s224_s1 + $0x8] sm:$0xff]  ;;  %v17_v4 = vmax.f32 %v15_v2, 0.0 }
   0x3   :  { %141 = vmatpush3.msra.mxu0 %v22_v0  ;;  %v16_v5 = vld [vmem:[%s223_s0 + $0x8] sm:$0xff] }
   0x4   :  { %8 = vsyncpa [#allocation3], 0  ;;  %142 = vmatprep.subr.mxu0 %v21_v1  ;;  %v19_v6 = vld [vmem:[%s224_s1] sm:$0xff]  ;;  %148 = vmatprep.mubr.msk.f32.mxu0 %vm30_vm0, %v17_v4  ;;  %v18_v7 = vmax.f32 %v16_v5, 0.0  ;;  %s176_s26 = smov [#allocation2]   ;;  %vm112_vm1 = vcmask 130048  }
   0x5   :  { %143 = vmatpush3.msra.mxu0 %v21_v1  ;;  %v131_v8 = vld [vmem:[%s225_s2] ss:$0 sm:$0xff]  ;;  %s120_s0 = sshll.u32 %s176_s26, 4  ;;  %s121_s0 = int_to_ptr.vmem [resolvable:$true] %s120_s0 }
   0x6   :  { %144 = vmatprep.subr.mxu0 %v20_v3  ;;  %s154_s1 = scalar_lea.vmem %s121_s0, 256  ;;  %p159_p1 = scmp.lt.s32.totalorder %s121_s0, %s121_s0 }
   0x7   :  { %145 = vmatpush3.msra.mxu0 %v20_v3  ;;  %p155_p0 = scmp.ne.s32.totalorder %s121_s0, %s154_s1  ;;  %p160_p2 = scmp.lt.s32.totalorder %s154_s1, %s154_s1 }
   0x8   :  { %146 = vmatprep.subr.mxu0 %v19_v6 }
   0x9   :  { %147 = vmatpush3.msra.mxu0 %v19_v6  ;;  %p161_p3 = por %p160_p2, %p159_p1 }
   0xa   :  { %149 = vmatmul.mubr.msk.f32.vlgmr.msra.gmra.mxu0 %vm30_vm0, %v18_v7 }
   0xb   :  { %p162_p4 = pnand %p161_p3, %p155_p0 }
  0xca   :  { %v150_v9 = vpop.f32.mrf.mxu0 }
  0xcb   :  { %v109_v10 = vadd.f32 %v150_v9, %v131_v8 }
  0xcc   :  { %v103_v11 = vpop.f32.mrf.mxu0 }
  0xcd   :  { %114 = vst.msk [vmem:[#allocation2 + $0x8] sm:$0xff] %vm112_vm1, %v109_v10  ;;  %v104_v12 = vadd.f32 %v131_v8, %v103_v11 }
  0xcf   :  { %113 = vst.msk [vmem:[#allocation2] sm:$0xff] %vm112_vm1, %v104_v12 }
  0xd0   :  { %165 = shalt.err (!%p162_p4)
}
  0xd1   :  { %s177_s27 = smov 128   ;;  %s178_s28 = smov 8  }
  0xd2   :  { %126 = dma.vmem_to_hbm [thread:$0]  %s121_s0, 256, %s226_s3, [#allocation3], %s177_s27, %s177_s27, %s178_s28  }
  0xd3   :  { %174 = dma.done.wait [#allocation3], 256  }
  0xd4   :  { %175 = vsyncadd [#allocation3], 4294967040 }
  0xd5   :  { %130 = vsyncpa [#allocation3], 1 }

</bundles_post_ra>
